<compile_context>
chip_gen: v7x
topology: tpu7x:2x2x1
jax: 0.10.0
libtpu: 0.0.40
codegen_flags: <defaults>
</compile_context>

<pallas_src>
import functools

import jax
import jax.numpy as jnp
from jax.experimental import pallas as pl
from jax.experimental.pallas import tpu as pltpu


def _round_up(x, m):
    return (x + m - 1) // m * m


def _cnnblock_kernel(x_ref, w_ref, shift_ref, o_ref, rhs_ref, *,
                     n_kh, n_kw, w_pad, stride, c_pad, l_out, neg_slope):
    # x_ref:     (1, C_pad, S_pad)     bf16  one zero-padded NCHW image, (H_pad, W_pad) flattened
    # w_ref:     (OC, KH*KW*C_pad)     bf16  BN-scale-folded conv weight, K ordered (kh, kw, c)
    # shift_ref: (OC, 1)               f32   folded BN shift (beta - mean*scale)
    # o_ref:     (1, OC, L_out)        out   lane-dense output (flattened spatial on lanes)
    # rhs_ref:   (KH*KW*C_pad, L_out)  bf16  VMEM scratch holding all shifted tap views
    t = 0
    for ikh in range(n_kh):
        for ikw in range(n_kw):
            d = ikh * w_pad + ikw
            if stride == 1:
                xs = x_ref[0, :, pl.ds(d, l_out)]                      # (C_pad, L_out) bf16
            else:
                # TODO(synk): strided-lane path (stride > 1) is untested on hardware.
                xs = x_ref[0, :, pl.ds(d, l_out, stride=stride)]
            # Sublane-aligned store (c_pad is a multiple of 8): each tap view staged exactly once.
            rhs_ref[pl.ds(t * c_pad, c_pad), :] = xs
            t += 1
    # Single fused MXU dot, K = KH*KW*C_pad (instead of KH*KW tiny K=C dots + serial acc adds).
    acc = jnp.dot(w_ref[...], rhs_ref[...], preferred_element_type=jnp.float32)  # (OC, L_out) f32
    y = acc + shift_ref[...]                                           # (OC, L_out) + (OC, 1)
    o_ref[0] = jnp.maximum(y, neg_slope * y).astype(o_ref.dtype)       # LeakyReLU(0.1), 1 VALU op


def cnn_block_forward(x, conv_w, gamma, beta, running_mean, running_var,
                      *, stride=1, padding=1, eps=1e-5, out_dtype=None):
    N, C, H, W = x.shape
    OC, Cw, KH, KW = conv_w.shape
    assert Cw == C
    out_dtype = x.dtype if out_dtype is None else out_dtype

    Hout = (H + 2 * padding - KH) // stride + 1
    Wout = (W + 2 * padding - KW) // stride + 1
    H_pad = H + 2 * padding
    W_pad = W + 2 * padding

    C_pad = _round_up(C, 8)                 # sublane-aligned tap slabs in the VMEM scratch
    K_total = KH * KW * C_pad               # fused contraction length of the single MXU dot

    Lq = Hout * W_pad                       # per-image output window incl. junk cols per row
    L_out = _round_up(Lq, 128)              # lane-dense, unmasked stores
    d_max = (KH - 1) * W_pad + (KW - 1)
    S_need = stride * (L_out - 1) + d_max + 1
    total_rows = max(H_pad, -(-S_need // W_pad))
    S_pad = total_rows * W_pad

    # --- fold eval-mode BatchNorm into the conv weight (scale) and a per-channel shift ---
    scale = gamma / jnp.sqrt(running_var + eps)                          # (OC,)
    shift = (beta - running_mean * scale).astype(jnp.float32).reshape(OC, 1)
    w_f = conv_w.astype(jnp.float32) * scale[:, None, None, None]        # (OC, C, KH, KW)
    w_f = jnp.transpose(w_f, (0, 2, 3, 1))                               # (OC, KH, KW, C)
    w_f = jnp.pad(w_f, ((0, 0), (0, 0), (0, 0), (0, C_pad - C)))         # zero-pad channels
    w_fused = w_f.reshape(OC, K_total).astype(jnp.bfloat16)              # one MXU slab

    # --- ONE fused pad (spatial + channel + flat-S tail) + bf16 cast + free reshape ---
    xflat = jnp.pad(
        x,
        ((0, 0), (0, C_pad - C),
         (padding, padding + (total_rows - H_pad)), (padding, padding)),
    ).astype(jnp.bfloat16).reshape(N, C_pad, S_pad)

    kernel = functools.partial(_cnnblock_kernel, n_kh=KH, n_kw=KW, w_pad=W_pad,
                               stride=stride, c_pad=C_pad, l_out=L_out, neg_slope=0.1)

    # --- derive the VMEM budget from actual block bytes (portable to v7x's 64 MiB) ---
    out_itemsize = jnp.dtype(out_dtype).itemsize
    in_block_bytes = C_pad * S_pad * 2                  # bf16 input block
    out_block_bytes = OC * L_out * out_itemsize
    fixed_bytes = OC * K_total * 2 + OC * 4 + K_total * L_out * 2   # weights + shift + rhs scratch
    vmem_limit = int(min(max(2 * (2 * in_block_bytes + 2 * out_block_bytes + fixed_bytes),
                             4 << 20), 32 << 20))

    cost = pl.CostEstimate(
        flops=2 * N * OC * K_total * L_out,
        transcendentals=0,
        bytes_accessed=int(N * in_block_bytes + fixed_bytes + N * out_block_bytes))

    out = pl.pallas_call(
        kernel,
        out_shape=jax.ShapeDtypeStruct((N, OC, L_out), out_dtype),
        grid_spec=pltpu.PrefetchScalarGridSpec(
            num_scalar_prefetch=0,
            grid=(N,),
            in_specs=[
                pl.BlockSpec((1, C_pad, S_pad), lambda n: (n, 0, 0)),    # one image per step
                pl.BlockSpec((OC, K_total), lambda n: (0, 0)),           # weight: VMEM-resident
                pl.BlockSpec((OC, 1), lambda n: (0, 0)),                 # BN shift
            ],
            out_specs=pl.BlockSpec((1, OC, L_out), lambda n: (n, 0, 0)),
            scratch_shapes=[pltpu.VMEM((K_total, L_out), jnp.bfloat16)],  # fused-dot RHS
        ),
        compiler_params=pltpu.CompilerParams(
            dimension_semantics=("parallel",),       # N>=2 grid steps feed both v7x TCs
            vmem_limit_bytes=vmem_limit,
        ),
        cost_estimate=cost,
    )(xflat, w_fused, shift)

    # (N, OC, L_out) -> NCHW: drop lane padding and the (W_pad - Wout) junk columns per row.
    # TODO(synk): a chained CNNBlock could consume the W_pad-strided layout directly and skip this.
    out = out[:, :, :Lq].reshape(N, OC, Hout, W_pad)[:, :, :, :Wout]
    return out


def _reference(x, conv_w, gamma, beta, running_mean, running_var,
               *, stride=1, padding=1, eps=1e-5):
    conv = jax.lax.conv_general_dilated(
        x, conv_w, (stride, stride), [(padding, padding), (padding, padding)],
        dimension_numbers=("NCHW", "OIHW", "NCHW"))
    mean = running_mean[None, :, None, None]
    var = running_var[None, :, None, None]
    g = gamma[None, :, None, None]
    b = beta[None, :, None, None]
    y = (conv - mean) / jnp.sqrt(var + eps) * g + b
    return jnp.where(y >= 0.0, y, 0.1 * y)


if __name__ == "__main__":
    # Small shapes consistent with CNNBlock(in_c=4, out_c=8, kernel_size=3, stride=1, padding=1)
    N, C, H, W = 2, 4, 16, 16
    OC, KH, KW = 8, 3, 3

    key = jax.random.PRNGKey(0)
    k_x, k_w, k_g, k_b, k_m, k_v = jax.random.split(key, 6)

    x = jax.random.normal(k_x, (N, C, H, W), dtype=jnp.float32)
    conv_w = jax.random.normal(k_w, (OC, C, KH, KW), dtype=jnp.float32) * 0.1
    gamma = 1.0 + 0.1 * jax.random.normal(k_g, (OC,), dtype=jnp.float32)
    beta = 0.1 * jax.random.normal(k_b, (OC,), dtype=jnp.float32)
    running_mean = 0.1 * jax.random.normal(k_m, (OC,), dtype=jnp.float32)
    running_var = jnp.abs(1.0 + 0.1 * jax.random.normal(k_v, (OC,), dtype=jnp.float32))

    out = cnn_block_forward(x, conv_w, gamma, beta, running_mean, running_var,
                            stride=1, padding=1)
    out = jax.block_until_ready(out)

    ref = _reference(x, conv_w, gamma, beta, running_mean, running_var,
                     stride=1, padding=1)
    assert out.shape == (N, OC, H, W), out.shape
    # bf16 MXU operands (f32 accumulation) => small numeric drift vs the f32 reference.
    assert jnp.allclose(out, ref, atol=5e-2, rtol=5e-2), "mismatch vs reference"

    print("KERNEL_OK")
</pallas_src>

<mosaic_0001>
module attributes {stable_mosaic.version = 11 : i64} {
  func.func @_cnnblock_kernel(%arg0: i32, %arg1: memref<1x8x432xbf16, #tpu.memory_space<vmem>>, %arg2: memref<8x72xbf16, #tpu.memory_space<vmem>>, %arg3: memref<8x1xf32, #tpu.memory_space<vmem>>, %arg4: memref<1x8x384xf32, #tpu.memory_space<vmem>>, %arg5: memref<72x384xbf16, #tpu.memory_space<vmem>>) attributes {dimension_semantics = [#tpu.dimension_semantics<parallel>], iteration_bounds = array<i64: 2>, scalar_prefetch = 0 : i64, scratch_operands = 1 : i64, tpu.core_type = #tpu.core_type<tc>, window_params = [{transform_indices = @transform_0, window_bounds = array<i64: 1, 8, 432>}, {pipeline_mode = #tpu.pipeline_mode<synchronous>, transform_indices = @transform_1, window_bounds = array<i64: 8, 72>}, {pipeline_mode = #tpu.pipeline_mode<synchronous>, transform_indices = @transform_2, window_bounds = array<i64: 8, 1>}, {transform_indices = @transform_3, window_bounds = array<i64: 1, 8, 384>}]} {
    %c0 = arith.constant 0 : index
    %c0_0 = arith.constant 0 : index
    %c0_1 = arith.constant 0 : index
    %0 = vector.load %arg1[%c0, %c0_0, %c0_1] : memref<1x8x432xbf16, #tpu.memory_space<vmem>>, vector<1x8x384xbf16>
    %1 = vector.shape_cast %0 : vector<1x8x384xbf16> to vector<8x384xbf16>
    %c0_2 = arith.constant 0 : index
    %c0_3 = arith.constant 0 : index
    %2 = vector.load %arg5[%c0_2, %c0_3] : memref<72x384xbf16, #tpu.memory_space<vmem>>, vector<8x384xbf16>
    tpu.vector_store %arg5[%c0_2, %c0_3], %1 {strides = array<i32>} : memref<72x384xbf16, #tpu.memory_space<vmem>>, vector<8x384xbf16>,
    %c0_4 = arith.constant 0 : index
    %c0_5 = arith.constant 0 : index
    %c1 = arith.constant 1 : index
    %3 = vector.load %arg1[%c0_4, %c0_5, %c1] : memref<1x8x432xbf16, #tpu.memory_space<vmem>>, vector<1x8x384xbf16>
    %4 = vector.shape_cast %3 : vector<1x8x384xbf16> to vector<8x384xbf16>
    %c8 = arith.constant 8 : index
    %c0_6 = arith.constant 0 : index
    %5 = vector.load %arg5[%c8, %c0_6] : memref<72x384xbf16, #tpu.memory_space<vmem>>, vector<8x384xbf16>
    tpu.vector_store %arg5[%c8, %c0_6], %4 {strides = array<i32>} : memref<72x384xbf16, #tpu.memory_space<vmem>>, vector<8x384xbf16>,
    %c0_7 = arith.constant 0 : index
    %c0_8 = arith.constant 0 : index
    %c2 = arith.constant 2 : index
    %6 = vector.load %arg1[%c0_7, %c0_8, %c2] : memref<1x8x432xbf16, #tpu.memory_space<vmem>>, vector<1x8x384xbf16>
    %7 = vector.shape_cast %6 : vector<1x8x384xbf16> to vector<8x384xbf16>
    %c16 = arith.constant 16 : index
    %c0_9 = arith.constant 0 : index
    %8 = vector.load %arg5[%c16, %c0_9] : memref<72x384xbf16, #tpu.memory_space<vmem>>, vector<8x384xbf16>
    tpu.vector_store %arg5[%c16, %c0_9], %7 {strides = array<i32>} : memref<72x384xbf16, #tpu.memory_space<vmem>>, vector<8x384xbf16>,
    %c0_10 = arith.constant 0 : index
    %c0_11 = arith.constant 0 : index
    %c18 = arith.constant 18 : index
    %9 = vector.load %arg1[%c0_10, %c0_11, %c18] : memref<1x8x432xbf16, #tpu.memory_space<vmem>>, vector<1x8x384xbf16>
    %10 = vector.shape_cast %9 : vector<1x8x384xbf16> to vector<8x384xbf16>
    %c24 = arith.constant 24 : index
    %c0_12 = arith.constant 0 : index
    %11 = vector.load %arg5[%c24, %c0_12] : memref<72x384xbf16, #tpu.memory_space<vmem>>, vector<8x384xbf16>
    tpu.vector_store %arg5[%c24, %c0_12], %10 {strides = array<i32>} : memref<72x384xbf16, #tpu.memory_space<vmem>>, vector<8x384xbf16>,
    %c0_13 = arith.constant 0 : index
    %c0_14 = arith.constant 0 : index
    %c19 = arith.constant 19 : index
    %12 = vector.load %arg1[%c0_13, %c0_14, %c19] : memref<1x8x432xbf16, #tpu.memory_space<vmem>>, vector<1x8x384xbf16>
    %13 = vector.shape_cast %12 : vector<1x8x384xbf16> to vector<8x384xbf16>
    %c32 = arith.constant 32 : index
    %c0_15 = arith.constant 0 : index
    %14 = vector.load %arg5[%c32, %c0_15] : memref<72x384xbf16, #tpu.memory_space<vmem>>, vector<8x384xbf16>
    tpu.vector_store %arg5[%c32, %c0_15], %13 {strides = array<i32>} : memref<72x384xbf16, #tpu.memory_space<vmem>>, vector<8x384xbf16>,
    %c0_16 = arith.constant 0 : index
    %c0_17 = arith.constant 0 : index
    %c20 = arith.constant 20 : index
    %15 = vector.load %arg1[%c0_16, %c0_17, %c20] : memref<1x8x432xbf16, #tpu.memory_space<vmem>>, vector<1x8x384xbf16>
    %16 = vector.shape_cast %15 : vector<1x8x384xbf16> to vector<8x384xbf16>
    %c40 = arith.constant 40 : index
    %c0_18 = arith.constant 0 : index
    %17 = vector.load %arg5[%c40, %c0_18] : memref<72x384xbf16, #tpu.memory_space<vmem>>, vector<8x384xbf16>
    tpu.vector_store %arg5[%c40, %c0_18], %16 {strides = array<i32>} : memref<72x384xbf16, #tpu.memory_space<vmem>>, vector<8x384xbf16>,
    %c0_19 = arith.constant 0 : index
    %c0_20 = arith.constant 0 : index
    %c36 = arith.constant 36 : index
    %18 = vector.load %arg1[%c0_19, %c0_20, %c36] : memref<1x8x432xbf16, #tpu.memory_space<vmem>>, vector<1x8x384xbf16>
    %19 = vector.shape_cast %18 : vector<1x8x384xbf16> to vector<8x384xbf16>
    %c48 = arith.constant 48 : index
    %c0_21 = arith.constant 0 : index
    %20 = vector.load %arg5[%c48, %c0_21] : memref<72x384xbf16, #tpu.memory_space<vmem>>, vector<8x384xbf16>
    tpu.vector_store %arg5[%c48, %c0_21], %19 {strides = array<i32>} : memref<72x384xbf16, #tpu.memory_space<vmem>>, vector<8x384xbf16>,
    %c0_22 = arith.constant 0 : index
    %c0_23 = arith.constant 0 : index
    %c37 = arith.constant 37 : index
    %21 = vector.load %arg1[%c0_22, %c0_23, %c37] : memref<1x8x432xbf16, #tpu.memory_space<vmem>>, vector<1x8x384xbf16>
    %22 = vector.shape_cast %21 : vector<1x8x384xbf16> to vector<8x384xbf16>
    %c56 = arith.constant 56 : index
    %c0_24 = arith.constant 0 : index
    %23 = vector.load %arg5[%c56, %c0_24] : memref<72x384xbf16, #tpu.memory_space<vmem>>, vector<8x384xbf16>
    tpu.vector_store %arg5[%c56, %c0_24], %22 {strides = array<i32>} : memref<72x384xbf16, #tpu.memory_space<vmem>>, vector<8x384xbf16>,
    %c0_25 = arith.constant 0 : index
    %c0_26 = arith.constant 0 : index
    %c38 = arith.constant 38 : index
    %24 = vector.load %arg1[%c0_25, %c0_26, %c38] : memref<1x8x432xbf16, #tpu.memory_space<vmem>>, vector<1x8x384xbf16>
    %25 = vector.shape_cast %24 : vector<1x8x384xbf16> to vector<8x384xbf16>
    %c64 = arith.constant 64 : index
    %c0_27 = arith.constant 0 : index
    %26 = vector.load %arg5[%c64, %c0_27] : memref<72x384xbf16, #tpu.memory_space<vmem>>, vector<8x384xbf16>
    tpu.vector_store %arg5[%c64, %c0_27], %25 {strides = array<i32>} : memref<72x384xbf16, #tpu.memory_space<vmem>>, vector<8x384xbf16>,
    %c0_28 = arith.constant 0 : index
    %c0_29 = arith.constant 0 : index
    %27 = vector.load %arg2[%c0_28, %c0_29] : memref<8x72xbf16, #tpu.memory_space<vmem>>, vector<8x72xbf16>
    %c0_30 = arith.constant 0 : index
    %c0_31 = arith.constant 0 : index
    %28 = vector.load %arg5[%c0_30, %c0_31] : memref<72x384xbf16, #tpu.memory_space<vmem>>, vector<72x384xbf16>
    %cst = arith.constant dense<0.000000e+00> : vector<8x384xf32>
    %29 = tpu.matmul %27, %28, %cst {dimension_numbers = #tpu.dot_dimension_numbers<[1], [0], [0], [1], [0, 0, 1, 1], [], []>} : vector<8x72xbf16>, vector<72x384xbf16>, vector<8x384xf32> -> vector<8x384xf32>
    %c0_32 = arith.constant 0 : index
    %c0_33 = arith.constant 0 : index
    %30 = vector.load %arg3[%c0_32, %c0_33] : memref<8x1xf32, #tpu.memory_space<vmem>>, vector<8x1xf32>
    %31 = vector.broadcast %30 : vector<8x1xf32> to vector<8x384xf32>
    %32 = arith.addf %29, %31 : vector<8x384xf32>
    %cst_34 = arith.constant 1.000000e-01 : f32
    %33 = vector.broadcast %cst_34 : f32 to vector<8x384xf32>
    %34 = arith.mulf %33, %32 : vector<8x384xf32>
    %35 = arith.maximumf %32, %34 : vector<8x384xf32>
    %c0_35 = arith.constant 0 : index
    %c0_36 = arith.constant 0 : index
    %c0_37 = arith.constant 0 : index
    %36 = vector.load %arg4[%c0_35, %c0_36, %c0_37] : memref<1x8x384xf32, #tpu.memory_space<vmem>>, vector<1x8x384xf32>
    %37 = vector.shape_cast %36 : vector<1x8x384xf32> to vector<8x384xf32>
    %38 = vector.shape_cast %35 : vector<8x384xf32> to vector<1x8x384xf32>
    tpu.vector_store %arg4[%c0_35, %c0_36, %c0_37], %38 {strides = array<i32>} : memref<1x8x384xf32, #tpu.memory_space<vmem>>, vector<1x8x384xf32>,
    return
  }
  func.func @transform_0(%arg0: i32) -> (i32, i32, i32) {
    %c0_i32 = arith.constant 0 : i32
    %c0_i32_0 = arith.constant 0 : i32
    %c0_i32_1 = arith.constant 0 : i32
    return %arg0, %c0_i32, %c0_i32_0 : i32, i32, i32
  }
  func.func @transform_1(%arg0: i32) -> (i32, i32) {
    %c0_i32 = arith.constant 0 : i32
    %c0_i32_0 = arith.constant 0 : i32
    %c0_i32_1 = arith.constant 0 : i32
    return %c0_i32, %c0_i32_0 : i32, i32
  }
  func.func @transform_2(%arg0: i32) -> (i32, i32) {
    %c0_i32 = arith.constant 0 : i32
    %c0_i32_0 = arith.constant 0 : i32
    %c0_i32_1 = arith.constant 0 : i32
    return %c0_i32, %c0_i32_0 : i32, i32
  }
  func.func @transform_3(%arg0: i32) -> (i32, i32, i32) {
    %c0_i32 = arith.constant 0 : i32
    %c0_i32_0 = arith.constant 0 : i32
    %c0_i32_1 = arith.constant 0 : i32
    return %arg0, %c0_i32, %c0_i32_0 : i32, i32, i32
  }
}

</mosaic_0001>

<bundles_post_ra>
// kernel: tpu_custom_call.1
= control target key start
LH: loop header
LB: loop body
LE: loop exit
PB: predicated region body
PF: predicated region fallthrough
CT: control target
= control target key end

     0   :  { %8 = vsyncpa [#allocation4], 0  ;;  %s1066_s0 = inlined_call_operand.hbm [shape: bf16[2,8,432], index: 0, kind: input, shape index: {}]   ;;  %s1067_s1 = inlined_call_operand.vmem [shape: bf16[8,72], index: 1, kind: input, shape index: {}]   ;;  %s1068_s2 = inlined_call_operand.vmem [shape: f32[8,1], index: 2, kind: input, shape index: {}]   ;;  %s1069_s3 = inlined_call_operand.hbm [shape: f32[2,8,384], index: 3, kind: output, shape index: {}]  }
   0x1   :  { %10 = vsyncpa [#allocation4 + $0x1], 0 }
   0x2   :  { %11 = vsyncpa [#allocation5], 0 }
   0x3   :  { %13 = vsyncpa [#allocation5 + $0x1], 0  ;;  %s869_s12 = smov 0   ;;  %s871_s13 = smov 0  }
   0x4   :  { %s873_s14 = smov 0   ;;  %s875_s15 = smov 0  }
   0x5 LB: > { %s890_s16 = sadd.s32 4294967295, %s834_s15   ;;  %s623_s17 = sadd.s32 4294967294, %s834_s15   ;;  %s834_s15 = sphi %s875_s15, %s1084_s15   ;;  %s830_s14 = sphi %s873_s14, %s1083_s14   ;;  %s826_s13 = sphi %s871_s13, %s1082_s13   ;;  %s822_s12 = sphi %s869_s12, %s1081_s12  }
   0x6   : > { %s894_s18 = sadd.s32 1, %s834_s15   ;;  %s26_s19 = sadd.s32 1, %s830_s14 }
   0x7   : > { %s23_s20 = ssub.s32 %s834_s15, %s894_s18  ;;  %p33_p0 = scmp.ne.s32.totalorder %s830_s14, %s826_s13 }
   0x8   : > { %p24_p1 = scmp.eq.s32.totalorder %s23_s20, 0  ;;  %p34_p2 = scmp.eq.s32.totalorder %s834_s15, 0 }
   0x9   : > { %p39_p3 = scmp.ne.s32.totalorder %s826_s13, %s822_s12  ;;  %p40_p4 = scmp.eq.s32.totalorder %s890_s16, 0 }
   0xa   : > { %s906_s21 = scalar_select %p24_p1, %s830_s14, %s26_s19  }
   0xb   : > { %p908_p5 = por %p34_p2, %p33_p0  ;;  %p912_p6 = por %p40_p4, %p39_p3 }
   0xc   : > { %p105_p7 = scmp.eq.s32.totalorder %s890_s16, 1  ;;  %p111_p8 = scmp.eq.s32.totalorder %s623_s17, 1 }
   0xd   : > { %p687_p10 = scmp.lt.s32.totalorder %s834_s15, 2  ;;  %s137_s26 = sand.u32 1, %s830_s14  }
   0xe   : > { %p919_p11 = por %p105_p7, %p33_p0  ;;  %p923_p12 = por %p111_p8, %p39_p3 }
   0xf   : > { %s652_s27 = sshll.u32 %s834_s15, 8  ;;  %s626_s28 = sshll.u32 %s137_s26, 4 }
  0x10   : > { %s1073_s24 = scalar_select %p919_p11, 1, 0 }
  0x11   : > { %s1074_s25 = scalar_select %p923_p12, 1, 0 }
  0x12   : > { %s932_s4 = scalar_lea.hbm %s1066_s0, %s652_s27  ;;  %s141_s5 = scalar_lea.vmem [#allocation3], %s626_s28 }
  0x13   : > { %s149_s6 = sshll.u32 %s141_s5, 4  ;;  %p936_p13 = pnand %p687_p10, %p908_p5  ;;  %s940_s6 = int_to_ptr.vmem [resolvable:$true] %s149_s6 }
  0x14   : > { %s138_s8 = scalar_lea.sflag [#allocation4], %s137_s26  ;;  %s738_s9 = scalar_lea.hbm %s932_s4, 256 }
  0x15   : > { %p739_p2 = scmp.ne.s32.totalorder %s932_s4, %s738_s9  ;;  %p740_p3 = pneg %p936_p13 }
  0x16   : > { %s743_s17 = scalar_lea.hbm %s1066_s0, 512  ;;  %p744_p5 = scmp.lt.u32.totalorder %s932_s4, %s1066_s0 }
  0x17   : > { %p741_p4 = pnand %p740_p3, %p739_p2  ;;  %p745_p8 = scmp.lt.u32.totalorder %s743_s17, %s738_s9 }
  0x18   : > { %p747_p9 = scmp.lt.u32.totalorder %s738_s9, %s932_s4 }
  0x19   : > { %p742_p7 = pneg %p741_p4  ;;  %p746_p10 = por %p745_p8, %p744_p5 }
  0x1b   : > { %p748_p0 = por %p747_p9, %p746_p10 }
  0x1d   : > { %p749_p1 = pnand %p748_p0, %p742_p7 }
  0x1f   : > { %752 = shalt.err (!%p749_p1)
}
  0x20   : > { %s753_s22 = scalar_lea.vmem %s940_s6, 256  ;;  %s836_s26 = smov [#allocation3]  }
  0x21   : > { %p754_p2 = scmp.ne.s32.totalorder %s940_s6, %s753_s22  ;;  %s758_s27 = sshll.u32 %s836_s26, 4  ;;  %s759_s27 = int_to_ptr.vmem [resolvable:$false] %s758_s27 }
  0x22   : > { %s760_s28 = scalar_lea.vmem %s759_s27, 512  ;;  %p761_p11 = scmp.lt.s32.totalorder %s940_s6, %s759_s27 }
  0x23   : > { %p756_p4 = pnand %p754_p2, %p740_p3  ;;  %p762_p5 = scmp.lt.s32.totalorder %s760_s28, %s753_s22 }
  0x25   : > { %p757_p12 = pneg %p756_p4  ;;  %p763_p8 = por %p762_p5, %p761_p11 }
  0x27   : > { %p764_p9 = pnand %p763_p8, %p757_p12 }
  0x29   : > { %767 = shalt.err (!%p764_p9)
}
  0x2a   : > { %682 = dma.hbm_to_vmem [thread:$0]  (!%p936_p13), %s932_s4, 256, %s940_s6, %s138_s8  }
  0x2b   : > { %p1076_p0 = scmp.lt.s32.totalorder %s834_s15, 3  ;;  %p1077_p1 = scmp.ge.s32.totalorder %s834_s15, 1 }
  0x2d   : > { %p155_p3 = pnand %p1077_p1, %p1076_p0 }
  0x2e   : > { %s974_s29 = sand.u32 (!%p155_p3), 1, %s826_s13  }
  0x2f   : > { %158 = sbr.rel (%p155_p3) target bundleno = 446 (0x1be), region = 32  ;;  %s630_s30 = sshll.u32 (!%p155_p3), %s974_s29, 4 }
  0x30   : > { %s161_s5 = scalar_lea.sflag (!%p155_p3), [#allocation4], %s974_s29  ;;  %s164_s9 = scalar_lea.vmem (!%p155_p3), [#allocation3], %s630_s30 }
  0x36   : > { %813 = dma.done.wait (%p912_p6), %s161_s5, 256  }
  0x37   : > { %815 = vsyncadd (%p912_p6), %s161_s5, 4294967040  ;;  %v982_v0 = vld [vmem:[%s164_s9] sm:$0xff]  ;;  %v189_v1 = vld [vmem:[%s164_s9 + $0x8] sm:$0xf]  ;;  %s837_s4 = smov 126   ;;  %s838_s6 = smov 127  }
  0x38   : > { %215 = vrot.lane.b32.xlu1 %v982_v0, %s837_s4  ;;  %196 = vrot.lane.b32.xlu0 %v982_v0, %s838_s6  ;;  %191 = vst [vmem:[#allocation2 + $0x8] sm:$0xf] %v189_v1  ;;  %v212_v2 = vld [vmem:[%s164_s9 + $0x8] sm:$0xff]  ;;  %v839_v3 = vmov 0.0   ;;  %s840_s7 = smov 110   ;;  %s841_s23 = smov 109  }
  0x39   : > { %659 = vmatprep.subr.bf16.mxu1 %v839_v3  ;;  %s842_s8 = smov 108   ;;  %s843_s10 = smov 92   ;;  %v845_v4 = vmov 0   ;;  %vm847_vm0 = vmmov 0   ;;  %v356_v5 = vld [vmem:[%s1068_s2] sm:$0xff]  ;;  %vm202_vm1 = vcmask 1043456  }
  0x3a   : > { %s844_s11 = smov 91   ;;  %480 = vmatprep.mubr.bf16.mxu0 %v845_v4  ;;  %732 = vset.pattern.permute.xlu0 %v845_v4  ;;  %s846_s17 = smov 90   ;;  %vm222_vm2 = vcmask 1031168   ;;  %vm204_vm3 = vcmask 1039360   ;;  %vm240_vm4 = vcmask 900096   ;;  %vm258_vm5 = vcmask 891904  }
  0x3b   : > { %669 = vmatprep.mubr.msk.bf16.mxu1 %vm847_vm0, %v839_v3  ;;  %vm276_vm6 = vcmask 883712   ;;  %vm294_vm7 = vcmask 752640   ;;  %vm312_vm8 = vcmask 744448   ;;  %vm330_vm9 = vcmask 736256   ;;  %s673_s27 = smul.u32 24, %s974_s29  ;;  %p1078_p11 = scmp.ne.s32.totalorder %s1073_s24, 0 }
  0x3c   : > { %217 = vrot.lane.b32.xlu1 %v212_v2, %s837_s4  ;;  %198 = vrot.lane.b32.xlu0 %v212_v2, %s838_s6  ;;  %vm434_vm10 = vcmask 588800   ;;  %s674_s30 = smul.u32 384, %s890_s16  ;;  %s848_s16 = smov [#allocation6]  }
  0x3d   : > { %s186_s28 = scalar_lea.vmem [#allocation6], %s673_s27 }
  0x3e   : > { %s553_s5 = sshll.u32 %s186_s28, 4  ;;  %s1022_s6 = scalar_lea.hbm %s1069_s3, %s674_s30  ;;  %s1024_s5 = int_to_ptr.vmem [resolvable:$true] %s553_s5 }
  0x40   : > { %235 = vrot.lane.b32.xlu1 %v212_v2, %s840_s7  ;;  %233 = vrot.lane.b32.xlu0 %v982_v0, %s840_s7  ;;  %s539_s7 = scalar_lea.sflag [#allocation5], %s974_s29 }
  0x44   : > { %253 = vrot.lane.b32.xlu1 %v212_v2, %s841_s23  ;;  %251 = vrot.lane.b32.xlu0 %v982_v0, %s841_s23  ;;  %s768_s23 = scalar_lea.vmem %s1024_s5, 384 }
  0x45   : > { %p769_p6 = scmp.ne.s32.totalorder %s1024_s5, %s768_s23 }
  0x47   : > { %p770_p12 = pnand %p769_p6, %p1078_p11 }
  0x48   : > { %271 = vrot.lane.b32.xlu1 %v212_v2, %s842_s8  ;;  %269 = vrot.lane.b32.xlu0 %v982_v0, %s842_s8  ;;  %s772_s8 = sshll.u32 %s848_s16, 4  ;;  %s773_s8 = int_to_ptr.vmem [resolvable:$false] %s772_s8 }
  0x49   : > { %p771_p13 = pneg %p770_p12  ;;  %p775_p7 = scmp.lt.s32.totalorder %s1024_s5, %s773_s8 }
  0x4c   : > { %289 = vrot.lane.b32.xlu1 %v212_v2, %s843_s10  ;;  %287 = vrot.lane.b32.xlu0 %v982_v0, %s843_s10  ;;  %s774_s10 = scalar_lea.vmem %s773_s8, 768 }
  0x4d   : > { %p776_p10 = scmp.lt.s32.totalorder %s774_s10, %s768_s23 }
  0x4f   : > { %p777_p2 = por %p776_p10, %p775_p7 }
  0x50   : > { %307 = vrot.lane.b32.xlu1 %v212_v2, %s844_s11  ;;  %305 = vrot.lane.b32.xlu0 %v982_v0, %s844_s11 }
  0x51   : > { %p778_p4 = pnand %p777_p2, %p771_p13 }
  0x54   : > { %325 = vrot.lane.b32.xlu1 %v212_v2, %s846_s17  ;;  %323 = vrot.lane.b32.xlu0 %v982_v0, %s846_s17 }
  0x58   : > { %359 = vperm.xlu0 %732, %v356_v5  }
  0xaa   : > { %v216_v6 = vpop.permute.xlu1 %215  ;;  %v197_v7 = vpop.permute.xlu0 %196 }
  0xab   : > { %v200_v8 = vrot.slane %v197_v7, 4  ;;  %v219_v11 = vrot.slane %v216_v6, 4 }
  0xae   : > { %v218_v9 = vpop.permute.xlu1 %217  ;;  %v199_v10 = vpop.permute.xlu0 %198 }
  0xaf   : > { %v220_v12 = vrot.slane %v218_v9, 4  ;;  %v201_v13 = vrot.slane %v199_v10, 4 }
  0xb1   : > { %v221_v14 = vsel %vm202_vm1, %v219_v11, %v220_v12  ;;  %v224_v15 = vsel %vm222_vm2, %v218_v9, %v220_v12  ;;  %v203_v16 = vsel %vm202_vm1, %v200_v8, %v201_v13  ;;  %v206_v17 = vsel %vm204_vm3, %v199_v10, %v201_v13 }
  0xb2   : > { %v223_v18 = vsel %vm222_vm2, %v216_v6, %v221_v14  ;;  %228 = vst [vmem:[#allocation2 + $0x20] sm:$0xf] %v224_v15  ;;  %v205_v19 = vsel %vm204_vm3, %v197_v7, %v203_v16  ;;  %210 = vst [vmem:[#allocation2 + $0x14] sm:$0xf] %v206_v17  ;;  %v236_v20 = vpop.permute.xlu1 %235  ;;  %v234_v21 = vpop.permute.xlu0 %233  ;;  %v337_v14 = vld [vmem:[%s1067_s1] sm:$0xf] }
  0xb3   : > { %v238_v22 = vrot.slane %v236_v20, 4  ;;  %v237_v23 = vrot.slane %v234_v21, 4  ;;  %v632_v24 = vcombine.high %v982_v0, %v205_v19  ;;  %v631_v25 = vcombine.low %v982_v0, %v205_v19 }
  0xb5   : > { %v242_v26 = vsel %vm240_vm4, %v236_v20, %v238_v22  ;;  %v239_v27 = vsel %vm202_vm1, %v237_v23, %v238_v22  ;;  %448 = vmatprep.subr.bf16.mxu0 %v632_v24 }
  0xb6   : > { %246 = vst [vmem:[#allocation2 + $0x2c] sm:$0xf] %v242_v26  ;;  %v241_v28 = vsel %vm240_vm4, %v234_v21, %v239_v27  ;;  %v254_v29 = vpop.permute.xlu1 %253  ;;  %v252_v30 = vpop.permute.xlu0 %251  ;;  %449 = vmatpush1.bf16.msra.mxu0 %v631_v25 }
  0xb7   : > { %v256_v31 = vrot.slane %v254_v29, 4  ;;  %v255_v32 = vrot.slane %v252_v30, 4  ;;  %v635_v33 = vcombine.high %v223_v18, %v241_v28  ;;  %v634_v34 = vcombine.low %v223_v18, %v241_v28 }
  0xb9   : > { %v260_v35 = vsel %vm258_vm5, %v254_v29, %v256_v31  ;;  %v257_v36 = vsel %vm202_vm1, %v255_v32, %v256_v31  ;;  %v733_v37 = vld [vmem:[#allocation2 + $0x8] ss:$12 sps:$4 sm:$0xff]   ;;  %450 = vmatprep.subr.bf16.mxu0 %v635_v33 }
  0xba   : > { %264 = vst [vmem:[#allocation2 + $0x38] sm:$0xf] %v260_v35  ;;  %v259_v38 = vsel %vm258_vm5, %v252_v30, %v257_v36  ;;  %v272_v39 = vpop.permute.xlu1 %271  ;;  %v270_v40 = vpop.permute.xlu0 %269  ;;  %451 = vmatpush1.bf16.msra.mxu0 %v634_v34  ;;  %660 = vmatpush3.bf16.msra.mxu1 %v733_v37 }
  0xbb   : > { %v274_v41 = vrot.slane %v272_v39, 4  ;;  %v273_v42 = vrot.slane %v270_v40, 4  ;;  %661 = vmatprep.subr.bf16.mxu1 %v839_v3 }
  0xbd   : > { %v278_v43 = vsel %vm276_vm6, %v272_v39, %v274_v41  ;;  %v275_v44 = vsel %vm202_vm1, %v273_v42, %v274_v41  ;;  %v734_v45 = vld [vmem:[#allocation2 + $0x20] ss:$12 sps:$4 sm:$0xff]  }
  0xbe   : > { %282 = vst [vmem:[#allocation2 + $0x44] sm:$0xf] %v278_v43  ;;  %v277_v46 = vsel %vm276_vm6, %v270_v40, %v275_v44  ;;  %v290_v47 = vpop.permute.xlu1 %289  ;;  %v288_v48 = vpop.permute.xlu0 %287  ;;  %662 = vmatpush3.bf16.msra.mxu1 %v734_v45 }
  0xbf   : > { %v292_v49 = vrot.slane %v290_v47, 4  ;;  %v291_v50 = vrot.slane %v288_v48, 4  ;;  %v638_v51 = vcombine.high %v259_v38, %v277_v46  ;;  %v637_v52 = vcombine.low %v259_v38, %v277_v46  ;;  %663 = vmatprep.subr.bf16.mxu1 %v839_v3 }
  0xc1   : > { %v296_v53 = vsel %vm294_vm7, %v290_v47, %v292_v49  ;;  %v293_v54 = vsel %vm202_vm1, %v291_v50, %v292_v49  ;;  %452 = vmatprep.subr.bf16.mxu0 %v638_v51 }
  0xc2   : > { %300 = vst [vmem:[#allocation2 + $0x50] sm:$0xf] %v296_v53  ;;  %v295_v55 = vsel %vm294_vm7, %v288_v48, %v293_v54  ;;  %v308_v56 = vpop.permute.xlu1 %307  ;;  %v306_v57 = vpop.permute.xlu0 %305  ;;  %453 = vmatpush1.bf16.msra.mxu0 %v637_v52 }
  0xc3   : > { %v310_v58 = vrot.slane %v308_v56, 4  ;;  %v309_v59 = vrot.slane %v306_v57, 4 }
  0xc5   : > { %v314_v60 = vsel %vm312_vm8, %v308_v56, %v310_v58  ;;  %v311_v61 = vsel %vm202_vm1, %v309_v59, %v310_v58  ;;  %v735_v62 = vld [vmem:[#allocation2 + $0x38] ss:$12 sps:$4 sm:$0xff]  }
  0xc6   : > { %318 = vst [vmem:[#allocation2 + $0x5c] sm:$0xf] %v314_v60  ;;  %v313_v63 = vsel %vm312_vm8, %v306_v57, %v311_v61  ;;  %v326_v0 = vpop.permute.xlu1 %325  ;;  %v324_v1 = vpop.permute.xlu0 %323  ;;  %664 = vmatpush3.bf16.msra.mxu1 %v735_v62 }
  0xc7   : > { %v328_v2 = vrot.slane %v326_v0, 4  ;;  %v327_v4 = vrot.slane %v324_v1, 4  ;;  %v641_v5 = vcombine.high %v295_v55, %v313_v63  ;;  %v640_v6 = vcombine.low %v295_v55, %v313_v63  ;;  %665 = vmatprep.subr.bf16.mxu1 %v839_v3 }
  0xc9   : > { %v332_v7 = vsel %vm330_vm9, %v326_v0, %v328_v2  ;;  %v329_v8 = vsel %vm202_vm1, %v327_v4, %v328_v2  ;;  %454 = vmatprep.subr.bf16.mxu0 %v641_v5 }
  0xca   : > { %336 = vst [vmem:[#allocation2 + $0x68] sm:$0xf] %v332_v7  ;;  %v331_v9 = vsel %vm330_vm9, %v324_v1, %v329_v8  ;;  %455 = vmatpush1.bf16.msra.mxu0 %v640_v6 }
  0xcb   : > { %v644_v10 = vcombine.high %v331_v9, %v331_v9  ;;  %v643_v11 = vcombine.low %v331_v9, %v331_v9 }
  0xcd   : > { %v736_v12 = vld [vmem:[#allocation2 + $0x50] ss:$12 sps:$4 sm:$0xff]   ;;  %646 = vmatprep.subr.msk.bf16.mxu0 %vm202_vm1, %v644_v10  ;;  %v440_v13 = vsel %vm202_vm1, %v643_v11, 0 }
  0xce   : > { %457 = vmatpush1.bf16.msra.mxu0 %v440_v13  ;;  %666 = vmatpush3.bf16.msra.mxu1 %v736_v12 }
  0xcf   : > { %667 = vmatprep.subr.bf16.mxu1 %v839_v3 }
  0xd1   : > { %v737_v15 = vld [vmem:[#allocation2 + $0x68] ss:$0 sps:$4 sm:$0xff]   ;;  %647 = vmatmul.mubr.msk.bf16.vlgmr.msra.gmra.mrb[0].mxu0 %vm434_vm10, %v337_v14 }
  0xd2   : > { %v446_v16 = vsel %vm202_vm1, %v737_v15, 0 }
  0xd3   : > { %668 = vmatpush3.bf16.msra.mxu1 %v446_v16 }
  0xd6   : > { %670 = vmatmul.mubr.msk.bf16.vlgmr.msra.gmra.mrb[0].mxu1 %vm434_vm10, %v337_v14 }
  0xd7   : > { %v360_v17 = vpop.permute.xlu0 %359 }
 0x1a4   : > { %v482_v18 = vpop.f32.mrb[0].mxu0 }
 0x1a5   : > { %v483_v19 = vadd.f32 %v482_v18, %v360_v17  ;;  %v484_v20 = vpop.f32.mrb[1].mxu0 }
 0x1a6   : > { %v485_v21 = vadd.f32 %v484_v20, %v360_v17  ;;  %v486_v22 = vpop.f32.mrb[2].mxu0 }
 0x1a7   : > { %v529_v23 = vmul.f32 0.1, %v483_v19  ;;  %v487_v24 = vpop.f32.mrb[3].mxu0 }
 0x1a8   : > { %v530_v25 = vmul.f32 0.1, %v485_v21 }
 0x1a9   : > { %v532_v26 = vmax.f32 %v483_v19, %v529_v23  ;;  %v523_v27 = vpop.f32.mrb[0].mxu1 }
 0x1aa   : > { %v533_v3 = vmax.f32 %v485_v21, %v530_v25  ;;  %v524_v28 = vadd.f32 %v523_v27, %v360_v17  ;;  %v671_v29 = vpop.f32.mrb[1].mxu1 }
 0x1ab   : > { %535 = vst [vmem:[%s186_s28] sm:$0xff] %v532_v26  ;;  %v526_v30 = vpop.f32.mrb[2].mxu1 }
 0x1ac   : > { %536 = vst [vmem:[%s186_s28 + $0x8] sm:$0xff] %v533_v3  ;;  %v531_v31 = vmul.f32 0.1, %v524_v28  ;;  %v672_v32 = vpop.f32.mrb[3].mxu1 }
 0x1ae   : > { %v534_v33 = vmax.f32 %v524_v28, %v531_v31 }
 0x1b0   : > { %537 = vst [vmem:[%s186_s28 + $0x10] sm:$0xff] %v534_v33 }
 0x1b1   : > { %781 = shalt.err (!%p778_p4)
}
 0x1b2   : > { %s782_s29 = scalar_lea.hbm %s1022_s6, 384  ;;  %s786_s19 = scalar_lea.hbm %s1069_s3, 768 }
 0x1b3   : > { %p783_p5 = scmp.ne.s32.totalorder %s1022_s6, %s782_s29  ;;  %p787_p0 = scmp.lt.u32.totalorder %s1022_s6, %s1069_s3 }
 0x1b4   : > { %p788_p1 = scmp.lt.u32.totalorder %s786_s19, %s782_s29  ;;  %p790_p6 = scmp.lt.u32.totalorder %s782_s29, %s1022_s6 }
 0x1b5   : > { %p784_p8 = pnand %p783_p5, %p1078_p11 }
 0x1b6   : > { %p789_p3 = por %p788_p1, %p787_p0 }
 0x1b7   : > { %p785_p9 = pneg %p784_p8 }
 0x1b8   : > { %p791_p12 = por %p790_p6, %p789_p3 }
 0x1ba   : > { %p792_p13 = pnand %p791_p12, %p785_p9 }
 0x1bc   : > { %795 = shalt.err (!%p792_p13)
}
 0x1bd   : > { %677 = dma.vmem_to_hbm [thread:$0]  (%p1078_p11), %s1024_s5, 384, %s1022_s6, %s539_s7  }
 0x1be PF: > { %s565_s26 = sand.u32 1, %s822_s12   ;;  %p1079_p7 = scmp.ne.s32.totalorder %s1074_s25, 0 }
 0x1bf   : > { %p1080_p10 = scmp.ge.s32.totalorder %s834_s15, 2  ;;  %s566_s27 = scalar_lea.sflag [#allocation5], %s565_s26 }
 0x1c1   : > { %p684_p2 = pnand %p1080_p10, %p1079_p7 }
 0x1c3   : > { %817 = dma.done.wait (!%p684_p2), %s566_s27, 384  }
 0x1c4   : > { %819 = vsyncadd (!%p684_p2), %s566_s27, 4294966912  ;;  %p16_p4 = scmp.ge.s32.totalorder %s894_s18, 4   ;;  %s1081_s12 = smov %s826_s13 }
 0x1c5   : > { %s1082_s13 = smov %s830_s14  ;;  %s1083_s14 = smov %s906_s21 }
 0x1c6   : > { %s1084_s15 = smov %s894_s18  ;;  %18 = sbr.rel (!%p16_p4) target bundleno = 5 (0x5), region = 77 }
 0x1cd   :  { %571 = vsyncpa [#allocation4], 1 }
 0x1ce   :  { %573 = vsyncpa [#allocation4 + $0x1], 1 }
 0x1cf   :  { %574 = vsyncpa [#allocation5], 1 }
 0x1d0   :  { %576 = vsyncpa [#allocation5 + $0x1], 1 }

</bundles_post_ra>
